<compile_context>
chip_gen: v7x
topology: tpu7x:2x2x1
jax: 0.10.0
libtpu: 0.0.40
codegen_flags: <defaults>
</compile_context>

<pallas_src>
import math
import numpy as np
import jax
import jax.numpy as jnp
from jax.experimental import pallas as pl
from jax.experimental.pallas import tpu as pltpu


# ---------------------------------------------------------------------------
# Kernel bodies
# ---------------------------------------------------------------------------
def _moe_body(x_ref, w_ref, o_ref, acc_ref, b_ref):
    # Grid = (m_block, n_block, k_block); contraction (k) is the last axis.
    #   x_ref  : (tm, Kp)      activation strip, resident across j and k
    #   w_ref  : (1, tk, tn)   pre-transposed expert weight tile
    #   b_ref  : (1, 1, tn)    f32 bias tile (or None -> bias-less kernel)
    #   o_ref  : (tm, tn)      lane-dense output tile
    #   acc_ref: (tm, tn) f32  VMEM accumulator scratch
    k = pl.program_id(2)
    nk = pl.num_programs(2)
    tk = w_ref.shape[1]

    @pl.when(k == 0)
    def _():
        acc_ref[...] = jnp.zeros_like(acc_ref)

    start = pl.multiple_of(k * tk, 128)
    x_chunk = x_ref[:, pl.ds(start, tk)]
    acc_ref[...] += jax.lax.dot_general(
        x_chunk, w_ref[0],
        dimension_numbers=(((1,), (0,)), ((), ())),     # (tm,tk) @ (tk,tn)
        preferred_element_type=jnp.float32)

    @pl.when(k == nk - 1)
    def _():
        acc = acc_ref[...]
        if b_ref is not None:
            acc = acc + b_ref[0, 0][None, :].astype(jnp.float32)
        o_ref[...] = acc.astype(o_ref.dtype)


def _moe_kernel_bias(eids_ref, x_ref, w_ref, b_ref, o_ref, acc_ref):
    del eids_ref  # only used by the index maps (scalar prefetch)
    _moe_body(x_ref, w_ref, o_ref, acc_ref, b_ref)


def _moe_kernel_nobias(eids_ref, x_ref, w_ref, o_ref, acc_ref):
    del eids_ref
    _moe_body(x_ref, w_ref, o_ref, acc_ref, None)


# ---------------------------------------------------------------------------
# Host-side helpers (static scheduling)
# ---------------------------------------------------------------------------
def _round_up(x, m):
    return -(-int(x) // int(m)) * int(m)


def _next_pow2(n):
    n = int(n)
    return 1 if n <= 1 else 1 << (n - 1).bit_length()


def _sublane(dtype):
    # sublane packing granularity per compute dtype: f32 -> 8, bf16 -> 16, 1B -> 32
    return {4: 8, 2: 16, 1: 32}.get(jnp.dtype(dtype).itemsize, 8)


def _pick_tile(dim, target, unit=128):
    """Largest multiple of `unit` dividing `dim` and <= target.

    `dim` is always padded to a multiple of `unit` by the caller, so this never
    falls back to a giant full-dimension block.
    """
    dim, target = int(dim), int(target)
    if dim <= target:
        return dim
    t = max(unit, (target // unit) * unit)
    while t >= unit:
        if dim % t == 0:
            return t
        t -= unit
    return dim


def _fit_tiles(tm, tn, tk, Kp, Np, c_bytes, o_bytes, sublane, budget):
    """Shrink tiles until the double-buffered VMEM footprint fits the budget."""
    def footprint(tm_, tn_, tk_):
        return (2 * tm_ * Kp * c_bytes       # resident activation strip (2 buffers)
                + 2 * tk_ * tn_ * c_bytes    # weight tile (2 buffers)
                + 2 * tn_ * 4                # bias tile
                + 2 * tm_ * tn_ * o_bytes    # output tile (2 buffers)
                + tm_ * tn_ * 4)             # f32 accumulator scratch

    while footprint(tm, tn, tk) > budget:
        w_bytes = 2 * tk * tn * c_bytes
        x_bytes = 2 * tm * Kp * c_bytes
        if w_bytes >= x_bytes and tk > 128:
            tk = _pick_tile(Kp, max(128, tk // 2))
        elif w_bytes >= x_bytes and tn > 128:
            tn = _pick_tile(Np, max(128, tn // 2))
        elif tm > sublane:
            tm = max(sublane, _round_up(tm // 2, sublane))
        elif tk > 128:
            tk = _pick_tile(Kp, max(128, tk // 2))
        elif tn > 128:
            tn = _pick_tile(Np, max(128, tn // 2))
        else:
            break
    return tm, tn, tk


# ---------------------------------------------------------------------------
# Module
# ---------------------------------------------------------------------------
class FMoELinearPallas:
    """Pallas-TPU forward of fastmoe's FMoELinear.

    Weight prep (cast to the MXU compute dtype, zero-pad feature dims to
    multiples of 128, transpose to [E, in_feat, out_feat]) happens ONCE at
    construction (parameter-load time), never in the per-step forward path.
    """

    def __init__(self, weight, bias=None, *, compute_dtype=jnp.bfloat16,
                 tm=512, tn=512, tk=1024,
                 vmem_budget_bytes=48 * 1024 * 1024,
                 vmem_limit_bytes=56 * 1024 * 1024,   # <= v7x 64 MiB per-TC VMEM
                 bucket_schedule=True):
        self.num_expert, self.out_feat, self.in_feat = (int(s) for s in weight.shape)
        self.out_dtype = weight.dtype
        self.compute_dtype = (jnp.dtype(compute_dtype) if compute_dtype is not None
                              else jnp.dtype(weight.dtype))
        self.Kp = _round_up(self.in_feat, 128)
        self.Np = _round_up(self.out_feat, 128)
        self.tm_target, self.tn_target, self.tk_target = int(tm), int(tn), int(tk)
        self.vmem_budget_bytes = int(vmem_budget_bytes)
        self.vmem_limit_bytes = int(vmem_limit_bytes)
        self.bucket_schedule = bool(bucket_schedule)
        self.has_bias = bias is not None

        w = jnp.asarray(weight).astype(self.compute_dtype)
        if (self.Np, self.Kp) != (self.out_feat, self.in_feat):
            w = jnp.pad(w, ((0, 0),
                            (0, self.Np - self.out_feat),
                            (0, self.Kp - self.in_feat)))
        # Canonical kernel layout [E, in(padded), out(padded)]: the MXU RHS tile
        # is (tk, tn) directly and output tiles stay lane-dense.
        self.w_t = jnp.swapaxes(w, 1, 2)

        if self.has_bias:
            b = jnp.asarray(bias).astype(jnp.float32)
            if self.Np != self.out_feat:
                b = jnp.pad(b, ((0, 0), (0, self.Np - self.out_feat)))
            self.bias3 = b.reshape(self.num_expert, 1, self.Np)
        else:
            self.bias3 = None

        self._cache = {}   # (tm, tn, tk, nb, total_padded) -> jitted pallas_call

    # -- compiled pallas_call, cached per static schedule shape ---------------
    def _get_fn(self, tm, tn, tk, nb, total_padded):
        key = (tm, tn, tk, nb, total_padded)
        fn = self._cache.get(key)
        if fn is not None:
            return fn

        nj = self.Np // tn
        nk = self.Kp // tk
        kernel = _moe_kernel_bias if self.has_bias else _moe_kernel_nobias

        in_specs = [
            # Activation strip resident across the n and k grid axes (block
            # index ignores j and k -> no re-DMA); tk chunks sliced in-kernel.
            pl.BlockSpec((tm, self.Kp), lambda i, j, k, e_ref: (i, 0)),
            pl.BlockSpec((1, tk, tn), lambda i, j, k, e_ref: (e_ref[i], k, j)),
        ]
        if self.has_bias:
            in_specs.append(
                pl.BlockSpec((1, 1, tn), lambda i, j, k, e_ref: (e_ref[i], 0, j)))

        fn = jax.jit(pl.pallas_call(
            kernel,
            out_shape=jax.ShapeDtypeStruct((total_padded, self.Np), self.out_dtype),
            grid_spec=pltpu.PrefetchScalarGridSpec(
                num_scalar_prefetch=1,
                grid=(nb, nj, nk),
                in_specs=in_specs,
                out_specs=pl.BlockSpec((tm, tn), lambda i, j, k, e_ref: (i, j)),
                scratch_shapes=[pltpu.VMEM((tm, tn), jnp.float32)],
            ),
            compiler_params=pltpu.CompilerParams(
                dimension_semantics=("parallel", "parallel", "arbitrary"),
                vmem_limit_bytes=self.vmem_limit_bytes),
        ))
        self._cache[key] = fn
        return fn

    def __call__(self, inp, fwd_expert_count):
        counts = np.asarray(fwd_expert_count, dtype=np.int64)
        assert counts.shape == (self.num_expert,)
        T = int(counts.sum())
        assert inp.shape == (T, self.in_feat)
        if T == 0:   # degenerate: no tokens routed to this worker
            return jnp.zeros((0, self.out_feat), dtype=self.out_dtype)

        c_bytes = jnp.dtype(self.compute_dtype).itemsize
        o_bytes = jnp.dtype(self.out_dtype).itemsize
        sub = _sublane(self.compute_dtype)

        # ---- static host-side schedule (fwd_expert_count is host data) ------
        max_count = int(counts.max())
        tm = min(self.tm_target, _round_up(max_count, sub))
        tm = max(sub, _round_up(tm, sub))
        tn = _pick_tile(self.Np, self.tn_target)
        tk = _pick_tile(self.Kp, self.tk_target)
        tm, tn, tk = _fit_tiles(tm, tn, tk, self.Kp, self.Np,
                                c_bytes, o_bytes, sub, self.vmem_budget_bytes)

        offsets = np.concatenate([[0], np.cumsum(counts)])
        padded_counts = ((counts + tm - 1) // tm) * tm
        padded_offsets = np.concatenate([[0], np.cumsum(padded_counts)])
        nb = int(padded_counts.sum()) // tm
        if self.bucket_schedule:        # stable shapes -> no retrace/recompile
            nb = _next_pow2(nb)
        total_padded = nb * tm

        # keep the (m, n) parallel grid >= 2 blocks so both v7x TCs get work
        if nb * (self.Np // tn) < 2 and self.Np >= 256:
            tn = _pick_tile(self.Np, max(128, tn // 2))

        src_idx = np.zeros((total_padded,), dtype=np.int32)  # padded row -> source row
        dst_idx = np.zeros((T,), dtype=np.int32)             # output row -> padded row
        block_eids = np.zeros((nb,), dtype=np.int32)
        for e in range(self.num_expert):
            c = int(counts[e]); pc = int(padded_counts[e])
            if pc == 0:
                continue
            p0 = int(padded_offsets[e]); o0 = int(offsets[e])
            src_idx[p0:p0 + c] = np.arange(o0, o0 + c, dtype=np.int32)
            dst_idx[o0:o0 + c] = np.arange(p0, p0 + c, dtype=np.int32)
            block_eids[p0 // tm:(p0 + pc) // tm] = e

        # ---- device-side forward --------------------------------------------
        x = jnp.asarray(inp).astype(self.compute_dtype)   # inp.type_as(weight) + MXU cast
        if self.Kp != self.in_feat:
            x = jnp.pad(x, ((0, 0), (0, self.Kp - self.in_feat)))
        # TODO(synk): replace this gather and the final de-pad gather with
        # scalar-prefetched element-offset (pl.Element) index maps so routing
        # happens inside the kernel and the activations take no extra HBM passes.
        x_padded = jnp.take(x, jnp.asarray(src_idx), axis=0)

        fn = self._get_fn(tm, tn, tk, nb, total_padded)
        args = (jnp.asarray(block_eids), x_padded, self.w_t)
        if self.has_bias:
            args = args + (self.bias3,)
        out_padded = fn(*args)

        out = jnp.take(out_padded, jnp.asarray(dst_idx), axis=0)  # drop pad rows
        if self.Np != self.out_feat:
            out = out[:, :self.out_feat]
        return out


def fmoe_linear_forward(inp, fwd_expert_count, weight, bias=None, **kwargs):
    """One-shot functional form. Prefer FMoELinearPallas for repeated calls so
    the weight transpose/pad/cast is hoisted out of the step."""
    return FMoELinearPallas(weight, bias, **kwargs)(inp, fwd_expert_count)


# ---------------------------------------------------------------------------
# Reference / init helpers + tests
# ---------------------------------------------------------------------------
def _kaiming_uniform(key, shape):
    # torch.nn.init.kaiming_uniform_(a=sqrt(5)) on [E, out_feat, in_feat]:
    # PyTorch fan_in = size(1) * prod(size(2:)) = out_feat * in_feat.
    fan_in = shape[1] * shape[2]
    bound = math.sqrt(6.0 / ((1.0 + 5.0) * fan_in))
    return jax.random.uniform(key, shape, jnp.float32, -bound, bound)


def _reference(x, counts, weight, bias):
    segs, off = [], 0
    for e in range(weight.shape[0]):
        c = int(counts[e])
        seg = jnp.einsum("td,od->to", x[off:off + c], weight[e],
                         precision=jax.lax.Precision.HIGHEST)
        if bias is not None:
            seg = seg + bias[e]
        segs.append(seg)
        off += c
    return jnp.concatenate(segs, axis=0)


if __name__ == "__main__":
    key = jax.random.PRNGKey(0)
    k1, k2, k3, k4 = jax.random.split(key, 4)

    # --- test 1: small, non-128-multiple feature dims, exact f32 path --------
    num_expert, in_feat, out_feat = 4, 32, 64
    counts1 = np.array([5, 0, 11, 8], dtype=np.int64)
    T1 = int(counts1.sum())
    w1 = _kaiming_uniform(k1, (num_expert, out_feat, in_feat))
    b1 = jnp.zeros((num_expert, out_feat), jnp.float32)   # torch.zeros init
    x1 = jax.random.normal(k2, (T1, in_feat), jnp.float32)

    mod1 = FMoELinearPallas(w1, b1, compute_dtype=None)    # f32 compute path
    out1 = jax.block_until_ready(mod1(x1, counts1))
    ref1 = _reference(x1, counts1, w1, b1)
    assert out1.shape == (T1, out_feat)
    assert jnp.allclose(out1, ref1, atol=2e-5, rtol=2e-5)

    # bias-less variant (separate kernel, no fabricated zero-bias stream)
    mod1nb = FMoELinearPallas(w1, None, compute_dtype=None)
    out1nb = jax.block_until_ready(mod1nb(x1, counts1))
    ref1nb = _reference(x1, counts1, w1, None)
    assert jnp.allclose(out1nb, ref1nb, atol=2e-5, rtol=2e-5)

    # --- test 2: default bf16 MXU path, exercises M/N/K tiling + accumulator -
    num_expert2, in_feat2, out_feat2 = 3, 256, 256
    counts2 = np.array([10, 70, 3], dtype=np.int64)
    T2 = int(counts2.sum())
    w2 = _kaiming_uniform(k3, (num_expert2, out_feat2, in_feat2))
    b2 = jax.random.normal(k4, (num_expert2, out_feat2), jnp.float32) * 0.1
    x2 = jax.random.normal(jax.random.PRNGKey(7), (T2, in_feat2), jnp.float32)

    mod2 = FMoELinearPallas(w2, b2, tn=128, tk=128)        # force 2x2 n/k tiling
    out2 = jax.block_until_ready(mod2(x2, counts2))
    out2b = jax.block_until_ready(mod2(x2, counts2))       # cached compiled call
    ref2 = _reference(x2, counts2, w2, b2)
    assert out2.shape == (T2, out_feat2)
    assert jnp.allclose(out2, ref2, atol=3e-2, rtol=3e-2)  # bf16 compute tolerance
    assert jnp.allclose(out2, out2b)

    print("KERNEL_OK")
</pallas_src>

<mosaic_0001>
module attributes {stable_mosaic.version = 11 : i64} {
  func.func @_moe_kernel_bias(%arg0: i32, %arg1: i32, %arg2: i32, %arg3: memref<4xi32, #tpu.memory_space<smem>>, %arg4: memref<16x128xf32, #tpu.memory_space<vmem>>, %arg5: memref<1x128x128xf32, #tpu.memory_space<vmem>>, %arg6: memref<1x1x128xf32, #tpu.memory_space<vmem>>, %arg7: memref<16x128xf32, #tpu.memory_space<vmem>>, %arg8: memref<16x128xf32, #tpu.memory_space<vmem>>) attributes {dimension_semantics = [#tpu.dimension_semantics<parallel>, #tpu.dimension_semantics<parallel>, #tpu.dimension_semantics<arbitrary>], iteration_bounds = array<i64: 4, 1, 1>, scalar_prefetch = 1 : i64, scratch_operands = 1 : i64, tpu.core_type = #tpu.core_type<tc>, window_params = [{transform_indices = @transform_0, window_bounds = array<i64: 16, 128>}, {transform_indices = @transform_1, window_bounds = array<i64: 1, 128, 128>}, {transform_indices = @transform_2, window_bounds = array<i64: 1, 1, 128>}, {transform_indices = @transform_3, window_bounds = array<i64: 16, 128>}]} {
    %c0_i32 = arith.constant 0 : i32
    %0 = arith.cmpi eq, %arg2, %c0_i32 : i32
    %1 = arith.extui %0 : i1 to i32
    %c0_i32_0 = arith.constant 0 : i32
    %2 = arith.cmpi ne, %1, %c0_i32_0 : i32
    scf.if %2 {
      %cst_10 = arith.constant 0.000000e+00 : f32
      %16 = vector.broadcast %cst_10 : f32 to vector<16x128xf32>
      %c0_11 = arith.constant 0 : index
      %c0_12 = arith.constant 0 : index
      %17 = vector.load %arg8[%c0_11, %c0_12] : memref<16x128xf32, #tpu.memory_space<vmem>>, vector<16x128xf32>
      tpu.vector_store %arg8[%c0_11, %c0_12], %16 {strides = array<i32>} : memref<16x128xf32, #tpu.memory_space<vmem>>, vector<16x128xf32>,
    } else {
    }
    %c128_i32 = arith.constant 128 : i32
    %3 = arith.muli %arg2, %c128_i32 : i32
    %4 = tpu.assume_multiple %3, 128 : i32
    %c0 = arith.constant 0 : index
    %5 = arith.index_cast %4 : i32 to index
    %6 = vector.load %arg4[%c0, %5] : memref<16x128xf32, #tpu.memory_space<vmem>>, vector<16x128xf32>
    %c0_1 = arith.constant 0 : index
    %c0_2 = arith.constant 0 : index
    %7 = vector.load %arg8[%c0_1, %c0_2] : memref<16x128xf32, #tpu.memory_space<vmem>>, vector<16x128xf32>
    %c0_3 = arith.constant 0 : index
    %c0_4 = arith.constant 0 : index
    %c0_5 = arith.constant 0 : index
    %8 = vector.load %arg5[%c0_3, %c0_4, %c0_5] : memref<1x128x128xf32, #tpu.memory_space<vmem>>, vector<1x128x128xf32>
    %9 = vector.shape_cast %8 : vector<1x128x128xf32> to vector<128x128xf32>
    %cst = arith.constant dense<0.000000e+00> : vector<16x128xf32>
    %10 = tpu.matmul %6, %9, %cst {dimension_numbers = #tpu.dot_dimension_numbers<[1], [0], [0], [1], [0, 0, 1, 1], [], []>} : vector<16x128xf32>, vector<128x128xf32>, vector<16x128xf32> -> vector<16x128xf32>
    %11 = arith.addf %7, %10 : vector<16x128xf32>
    %c0_6 = arith.constant 0 : index
    %c0_7 = arith.constant 0 : index
    %12 = vector.load %arg8[%c0_6, %c0_7] : memref<16x128xf32, #tpu.memory_space<vmem>>, vector<16x128xf32>
    tpu.vector_store %arg8[%c0_6, %c0_7], %11 {strides = array<i32>} : memref<16x128xf32, #tpu.memory_space<vmem>>, vector<16x128xf32>,
    %c0_i32_8 = arith.constant 0 : i32
    %13 = arith.cmpi eq, %arg2, %c0_i32_8 : i32
    %14 = arith.extui %13 : i1 to i32
    %c0_i32_9 = arith.constant 0 : i32
    %15 = arith.cmpi ne, %14, %c0_i32_9 : i32
    scf.if %15 {
      %c0_10 = arith.constant 0 : index
      %c0_11 = arith.constant 0 : index
      %16 = vector.load %arg8[%c0_10, %c0_11] : memref<16x128xf32, #tpu.memory_space<vmem>>, vector<16x128xf32>
      %c0_12 = arith.constant 0 : index
      %c0_13 = arith.constant 0 : index
      %c0_14 = arith.constant 0 : index
      %17 = vector.load %arg6[%c0_12, %c0_13, %c0_14] : memref<1x1x128xf32, #tpu.memory_space<vmem>>, vector<1x1x128xf32>
      %18 = vector.shape_cast %17 : vector<1x1x128xf32> to vector<128xf32>
      %19 = vector.shape_cast %18 : vector<128xf32> to vector<1x128xf32>
      %20 = vector.broadcast %19 : vector<1x128xf32> to vector<16x128xf32>
      %21 = arith.addf %16, %20 : vector<16x128xf32>
      %c0_15 = arith.constant 0 : index
      %c0_16 = arith.constant 0 : index
      %22 = vector.load %arg7[%c0_15, %c0_16] : memref<16x128xf32, #tpu.memory_space<vmem>>, vector<16x128xf32>
      tpu.vector_store %arg7[%c0_15, %c0_16], %21 {strides = array<i32>} : memref<16x128xf32, #tpu.memory_space<vmem>>, vector<16x128xf32>,
    } else {
    }
    return
  }
  func.func @transform_0(%arg0: i32, %arg1: i32, %arg2: i32, %arg3: memref<4xi32, #tpu.memory_space<smem>>) -> (i32, i32) {
    %c0_i32 = arith.constant 0 : i32
    %c0_i32_0 = arith.constant 0 : i32
    return %arg0, %c0_i32 : i32, i32
  }
  func.func @transform_1(%arg0: i32, %arg1: i32, %arg2: i32, %arg3: memref<4xi32, #tpu.memory_space<smem>>) -> (i32, i32, i32) {
    %0 = arith.index_cast %arg0 : i32 to index
    %1 = memref.load %arg3[%0] : memref<4xi32, #tpu.memory_space<smem>>
    %c0_i32 = arith.constant 0 : i32
    return %1, %arg2, %arg1 : i32, i32, i32
  }
  func.func @transform_2(%arg0: i32, %arg1: i32, %arg2: i32, %arg3: memref<4xi32, #tpu.memory_space<smem>>) -> (i32, i32, i32) {
    %0 = arith.index_cast %arg0 : i32 to index
    %1 = memref.load %arg3[%0] : memref<4xi32, #tpu.memory_space<smem>>
    %c0_i32 = arith.constant 0 : i32
    %c0_i32_0 = arith.constant 0 : i32
    return %1, %c0_i32, %arg1 : i32, i32, i32
  }
  func.func @transform_3(%arg0: i32, %arg1: i32, %arg2: i32, %arg3: memref<4xi32, #tpu.memory_space<smem>>) -> (i32, i32) {
    %c0_i32 = arith.constant 0 : i32
    return %arg0, %arg1 : i32, i32
  }
}

</mosaic_0001>

<bundles_post_ra>
// kernel: tpu_custom_call.1
= control target key start
LH: loop header
LB: loop body
LE: loop exit
PB: predicated region body
PF: predicated region fallthrough
CT: control target
= control target key end

     0   :  { %s1341_s0 = inlined_call_operand.hbm [shape: s32[4], index: 0, kind: input, shape index: {}]   ;;  %s1342_s1 = inlined_call_operand.hbm [shape: f32[64,128], index: 1, kind: input, shape index: {}]   ;;  %s1343_s2 = inlined_call_operand.hbm [shape: f32[4,128,128], index: 2, kind: input, shape index: {}]   ;;  %s1344_s3 = inlined_call_operand.vmem [shape: f32[4,1,128], index: 3, kind: input, shape index: {}]   ;;  %s1345_s4 = inlined_call_operand.hbm [shape: f32[64,128], index: 4, kind: output, shape index: {}]  }
   0x1   :  { %1355 = sst [smem:[#allocation19_spill]] %s1342_s1  ;;  %s775_s17 = scalar_lea.hbm %s1341_s0, 16 }
   0x2   :  { %p776_p0 = scmp.ne.s32.totalorder %s1341_s0, %s775_s17  ;;  %p779_p1 = scmp.lt.u32.totalorder %s775_s17, %s1341_s0 }
   0x4   :  { %p781_p2 = pnand %p779_p1, %p776_p0 }
   0x6   :  { %784 = shalt.err (!%p781_p2)  }
   0x7   :  { %s959_s22 = smov [#allocation4]  }
   0x8   :  { %10 = dma.hbm_to_smem %s1341_s0, 16, %s959_s22, [#allocation3] }
   0x9   :  { %909 = dma.done.wait [#allocation3], 16 }
   0xa   :  { %910 = vsyncadd [#allocation3], 4294967280 }
   0xb   :  { %12 = sfence }
   0xc   :  { %13 = vsyncpa [#allocation6], 0 }
   0xd   :  { %15 = vsyncpa [#allocation6 + $0x1], 0 }
   0xe   :  { %16 = vsyncpa [#allocation9], 0 }
   0xf   :  { %18 = vsyncpa [#allocation9 + $0x1], 0 }
  0x10   :  { %19 = vsyncpa [#allocation7], 0 }
  0x11   :  { %21 = vsyncpa [#allocation7 + $0x1], 0  ;;  %s1004_s25 = smov 0   ;;  %s1006_s26 = smov 0  }
  0x12   :  { %s1008_s27 = smov 0   ;;  %s1010_s28 = smov 0  }
  0x13   :  { %s1012_s29 = smov 0   ;;  %s1014_s0 = smov 0  }
  0x14   :  { %s1016_s30 = smov 0   ;;  %s1018_s5 = smov 0  }
  0x15   :  { %s1020_s6 = smov 0  }
  0x16 LB: > { %1356 = sst [smem:[#allocation17_spill]] %s953_s5  ;;  %s567_s7 = sadd.s32 4294967295, %s957_s6   ;;  %s957_s6 = sphi %s1020_s6, %s27_s6   ;;  %s953_s5 = sphi %s1018_s5, %s1380_s5   ;;  %s949_s30 = sphi %s1016_s30, %s1379_s30   ;;  %s945_s0 = sphi %s1014_s0, %s1386_s0   ;;  %s941_s29 = sphi %s1012_s29, %s1385_s29   ;;  %s937_s28 = sphi %s1010_s28, %s1384_s28   ;;  %s933_s27 = sphi %s1008_s27, %s1383_s27   ;;  %s929_s26 = sphi %s1006_s26, %s1382_s26   ;;  %s925_s25 = sphi %s1004_s25, %s1381_s25  }
  0x17   : > { %s568_s8 = sadd.s32 4294967294, %s957_s6   ;;  %s46_s9 = sadd.s32 1, %s953_s5 }
  0x18   : > { %s53_s10 = sadd.s32 1, %s945_s0  ;;  %p48_p3 = scmp.ge.s32.totalorder %s46_s9, 4 }
  0x19   : > { %p60_p4 = scmp.ne.s32.totalorder %s945_s0, %s941_s29  ;;  %p1348_p5 = scmp.eq.s32.totalorder %s957_s6, 0 }
  0x1a   : > { %p66_p6 = scmp.ne.s32.totalorder %s941_s29, %s937_s28  ;;  %s1388_s9 = smov (%p48_p3, %s46_s9), 0 }
  0x1b   : > { %1357 = sst [smem:[#allocation18_spill]] %s1388_s9  ;;  %p1065_p7 = por %p1348_p5, %p60_p4 }
  0x1c   : > { %p1069_p8 = scmp.eq.s32.totalorder %s567_s7, 0  ;;  %s50_s13 = ssub.s32 %s953_s5, %s1388_s9 }
  0x1d   : > { %s1076_s14 = sld [smem:[#allocation4 + %s953_s5]]  ;;  %p51_p9 = scmp.eq.s32.totalorder %s50_s13, 0 }
  0x1e   : > { %p1083_p10 = por %p1069_p8, %p66_p6  ;;  %s1088_s16 = sld [smem:[#allocation4 + %s1388_s9]] }
  0x1f   : > { %p154_p11 = scmp.eq.s32.totalorder %s567_s7, 3  ;;  %p160_p13 = scmp.eq.s32.totalorder %s568_s8, 3 }
  0x20   : > { %s1360_s15 = scalar_select %p1083_p10, 1, 0 }
  0x21   : > { %s1091_s17 = scalar_select %p51_p9, %s945_s0, %s53_s10  }
  0x22   : > { %p1096_p12 = por %p154_p11, %p60_p4  ;;  %p1347_p0 = scmp.lt.s32.totalorder %s957_s6, 4 }
  0x23   : > { %p1104_p1 = por %p160_p13, %p66_p6  ;;  %s180_s20 = sand.u32 1, %s945_s0  }
  0x24   : > { %s1361_s18 = scalar_select %p1096_p12, 1, 0 }
  0x25   : > { %s1362_s19 = scalar_select %p1104_p1, 1, 0 }
  0x26   : > { %s571_s21 = sshll.u32 %s180_s20, 4  ;;  %s587_s22 = sshll.u32 %s953_s5, 8 }
  0x27   : > { %s1363_s1 = sld [smem:[#allocation19_spill]]  ;;  %s184_s10 = scalar_lea.vmem [#allocation5], %s571_s21 }
  0x28   : > { %s191_s8 = sshll.u32 %s184_s10, 4  ;;  %p1121_p2 = pnand %p1347_p0, %p1065_p7  ;;  %s1115_s8 = int_to_ptr.vmem [resolvable:$true] %s191_s8 }
  0x29   : > { %s1126_s23 = scalar_lea.sflag [#allocation6], %s180_s20 }
  0x2a   : > { %p787_p6 = pneg %p1121_p2 }
  0x2d   : > { %s1113_s7 = scalar_lea.hbm %s1363_s1, %s587_s22  ;;  %s790_s24 = scalar_lea.hbm %s1363_s1, 1024 }
  0x2e   : > { %s785_s22 = scalar_lea.hbm %s1113_s7, 256  ;;  %p791_p7 = scmp.lt.u32.totalorder %s1113_s7, %s1363_s1 }
  0x2f   : > { %p786_p4 = scmp.ne.s32.totalorder %s1113_s7, %s785_s22  ;;  %p792_p13 = scmp.lt.u32.totalorder %s790_s24, %s785_s22 }
  0x30   : > { %p794_p5 = scmp.lt.u32.totalorder %s785_s22, %s1113_s7 }
  0x31   : > { %p788_p9 = pnand %p787_p6, %p786_p4  ;;  %p793_p0 = por %p792_p13, %p791_p7 }
  0x33   : > { %p789_p11 = pneg %p788_p9  ;;  %p795_p3 = por %p794_p5, %p793_p0 }
  0x35   : > { %p796_p1 = pnand %p795_p3, %p789_p11 }
  0x37   : > { %799 = shalt.err (!%p796_p1)
}
  0x38   : > { %s800_s20 = scalar_lea.vmem %s1115_s8, 256  ;;  %s960_s21 = smov [#allocation5]  }
  0x39   : > { %p801_p4 = scmp.ne.s32.totalorder %s1115_s8, %s800_s20  ;;  %s805_s11 = sshll.u32 %s960_s21, 4  ;;  %s806_s11 = int_to_ptr.vmem [resolvable:$false] %s805_s11 }
  0x3a   : > { %s807_s9 = scalar_lea.vmem %s806_s11, 512  ;;  %p808_p10 = scmp.lt.s32.totalorder %s1115_s8, %s806_s11 }
  0x3b   : > { %p803_p9 = pnand %p801_p4, %p787_p6  ;;  %p809_p7 = scmp.lt.s32.totalorder %s807_s9, %s800_s20 }
  0x3d   : > { %p804_p12 = pneg %p803_p9  ;;  %p810_p13 = por %p809_p7, %p808_p10 }
  0x3f   : > { %p811_p5 = pnand %p810_p13, %p804_p12 }
  0x41   : > { %814 = shalt.err (!%p811_p5)
}
  0x42   : > { %s1351_s22 = smov 128   ;;  %s1352_s24 = smov 8  }
  0x43   : > { %686 = dma.hbm_to_vmem [thread:$0]  (!%p1121_p2), %s1113_s7, 256, %s1115_s8, %s1126_s23, %s1351_s22, %s1351_s22, %s1352_s24  }
  0x44   : > { %p235_p10 = scmp.lt.s32.totalorder %s957_s6, 5  ;;  %p1365_p12 = scmp.ge.s32.totalorder %s957_s6, 1 }
  0x45   : > { %s78_s20 = ssub.s32 %s1076_s14, %s1088_s16  ;;  %s85_s21 = sadd.s32 1, %s933_s27 }
  0x46   : > { %p1160_p0 = pnand %p1365_p12, %p235_p10  ;;  %p83_p1 = scmp.eq.s32.totalorder %s78_s20, 0 }
  0x47   : > { %p92_p3 = scmp.ne.s32.totalorder %s933_s27, %s929_s26  ;;  %p98_p6 = scmp.ne.s32.totalorder %s929_s26, %s925_s25 }
  0x48   : > { %s201_s11 = sand.u32 1, %s933_s27   ;;  %p1367_p11 = scmp.eq.s32.totalorder %s957_s6, 0 }
  0x49   : > { %s1173_s13 = scalar_select %p83_p1, %s933_s27, %s85_s21  }
  0x4a   : > { %p94_p4 = por %p92_p3, %p1367_p11  ;;  %p1179_p2 = por %p98_p6, %p1069_p8 }
  0x4b   : > { %s574_s8 = sshll.u32 %s201_s11, 7  ;;  %p1369_p9 = scmp.lt.s32.totalorder %s957_s6, 4 }
  0x4c   : > { %s1368_s7 = scalar_select %p1179_p2, 1, 0 }
  0x4d   : > { %p1185_p7 = pnand %p1369_p9, %p94_p4  ;;  %p1371_p13 = pmov %p1369_p9 }
  0x4e   : > { %s676_s14 = scalar_select %p94_p4, [#allocation4], [#allocation11] }
  0x4f   : > { %s677_s25 = scalar_select %p94_p4, %s953_s5, 0 }
  0x50   : > { %s1390_s14 = smov (!%p1371_p13, %s676_s14), [#allocation12]  ;;  %p1372_p5 = pmov %p1369_p9 }
  0x51   : > { %s205_s12 = scalar_lea.vmem [#allocation8], %s574_s8  ;;  %s1201_s1 = scalar_lea.sflag [#allocation9], %s201_s11 }
  0x52   : > { %s1392_s25 = smov (!%p1372_p5, %s677_s25), 0  ;;  %s216_s9 = sshll.u32 %s205_s12, 4  ;;  %s1194_s9 = int_to_ptr.vmem [resolvable:$true] %s216_s9 }
  0x53   : > { %s206_s16 = sld [smem:[%s1390_s14 + %s1392_s25]]  ;;  %p817_p10 = pneg %p1185_p7 }
  0x54   : > { %s820_s22 = scalar_lea.hbm %s1343_s2, 8192 }
  0x59   : > { %s588_s20 = sshll.u32 %s206_s16, 11 }
  0x5a   : > { %s1199_s24 = scalar_lea.hbm %s1343_s2, %s588_s20 }
  0x5b   : > { %s815_s5 = scalar_lea.hbm %s1199_s24, 2048  ;;  %p821_p3 = scmp.lt.u32.totalorder %s1199_s24, %s1343_s2 }
  0x5c   : > { %p816_p8 = scmp.ne.s32.totalorder %s1199_s24, %s815_s5  ;;  %p822_p6 = scmp.lt.u32.totalorder %s820_s22, %s815_s5 }
  0x5d   : > { %p824_p4 = scmp.lt.u32.totalorder %s815_s5, %s1199_s24 }
  0x5e   : > { %p818_p12 = pnand %p817_p10, %p816_p8  ;;  %p823_p11 = por %p822_p6, %p821_p3 }
  0x60   : > { %p819_p1 = pneg %p818_p12  ;;  %p825_p9 = por %p824_p4, %p823_p11 }
  0x62   : > { %p826_p13 = pnand %p825_p9, %p819_p1 }
  0x64   : > { %829 = shalt.err (!%p826_p13)
}
  0x65   : > { %s830_s11 = scalar_lea.vmem %s1194_s9, 2048  ;;  %s963_s12 = smov [#allocation8]  }
  0x66   : > { %p831_p5 = scmp.ne.s32.totalorder %s1194_s9, %s830_s11  ;;  %s835_s20 = sshll.u32 %s963_s12, 4  ;;  %s836_s20 = int_to_ptr.vmem [resolvable:$false] %s835_s20 }
  0x67   : > { %s837_s21 = scalar_lea.vmem %s836_s20, 4096  ;;  %p838_p2 = scmp.lt.s32.totalorder %s1194_s9, %s836_s20 }
  0x68   : > { %p833_p8 = pnand %p831_p5, %p817_p10  ;;  %p839_p3 = scmp.lt.s32.totalorder %s837_s21, %s830_s11 }
  0x6a   : > { %p834_p12 = pneg %p833_p8  ;;  %p840_p6 = por %p839_p3, %p838_p2 }
  0x6c   : > { %p841_p11 = pnand %p840_p6, %p834_p12 }
  0x6e   : > { %844 = shalt.err (!%p841_p11)
}
  0x6f   : > { %s1373_s5 = smov 8   ;;  %s1374_s8 = smov 128  }
  0x70   : > { %691 = dma.hbm_to_vmem [thread:$0]  (!%p1185_p7), %s1199_s24, 2048, %s1194_s9, %s1201_s1, %s1374_s8, %s1374_s8, %s1373_s5  }
  0x71   : > { %239 = sbr.rel (%p1160_p0) target bundleno = 390 (0x186), region = 32  ;;  %s1235_s14 = sand.u32 (!%p1160_p0), 1, %s941_s29  }
  0x72   : > { %s578_s22 = sshll.u32 (!%p1160_p0), %s1235_s14, 4  ;;  %s242_s25 = scalar_lea.sflag (!%p1160_p0), [#allocation6], %s1235_s14 }
  0x73   : > { %s1241_s23 = scalar_lea.vmem (!%p1160_p0), [#allocation5], %s578_s22  ;;  %p1375_p2 = scmp.ne.s32.totalorder (!%p1160_p0), %s1360_s15, 0 }
  0x78   : > { %912 = dma.done.wait (%p1375_p2), %s242_s25, 256  }
  0x79   : > { %914 = vsyncadd (%p1375_p2), %s242_s25, 4294967040  ;;  %s250_s1 = sand.u32 1, %s929_s26   ;;  %p1376_p0 = scmp.ne.s32.totalorder %s1368_s7, 0 }
  0x7a   : > { %s579_s24 = sshll.u32 %s250_s1, 7  ;;  %s251_s10 = scalar_lea.sflag [#allocation9], %s250_s1 }
  0x7b   : > { %s1248_s9 = scalar_lea.vmem [#allocation8], %s579_s24 }
  0x7c   : > { %916 = dma.done.wait (%p1376_p0), %s251_s10, 2048  }
  0x7d   : > { %918 = vsyncadd (%p1376_p0), %s251_s10, 4294965248  ;;  %v315_v0 = vld [vmem:[%s1248_s9] sm:$0xff]  ;;  %v316_v1 = vld [vmem:[%s1248_s9 + $0x8] sm:$0xff]  ;;  %s292_s15 = sld [smem:[#allocation4 + %s949_s30]]  ;;  %s288_s12 = scalar_lea.vmem [#allocation10], %s578_s22 }
  0x7e   : > { %v317_v2 = vld [vmem:[%s1248_s9 + $0x10] sm:$0xff]  ;;  %v643_v3 = vpack.c.bf16 %v316_v1, %v315_v0  ;;  %v318_v4 = vld [vmem:[%s1248_s9 + $0x18] sm:$0xff]  ;;  %v319_v6 = vld [vmem:[%s1248_s9 + $0x20] sm:$0xff]  ;;  %s441_s20 = sshll.u32 %s288_s12, 4  ;;  %s589_s21 = sshll.u32 %s949_s30, 8  ;;  %s1279_s20 = int_to_ptr.vmem [resolvable:$true] %s441_s20 }
  0x7f   : > { %v647_v5 = vpack.c.bf16 %v318_v4, %v317_v2  ;;  %v320_v7 = vld [vmem:[%s1248_s9 + $0x28] sm:$0xff]  ;;  %v311_v9 = vld [vmem:[%s1241_s23] sm:$0xff]  ;;  %v322_v11 = vld [vmem:[%s1248_s9 + $0x38] sm:$0xff]  ;;  %s1284_s25 = scalar_lea.hbm %s1345_s4, %s589_s21  ;;  %s427_s22 = scalar_lea.sflag [#allocation7], %s1235_s14 }
  0x80   : > { %644 = vmatprep.subr.bf16.mxu0 %v643_v3  ;;  %v651_v8 = vpack.c.bf16 %v320_v7, %v319_v6  ;;  %v321_v10 = vld [vmem:[%s1248_s9 + $0x30] sm:$0xff]  ;;  %640 = vmatprep.mubr.f32.mxu0 %v311_v9  ;;  %v323_v13 = vld [vmem:[%s1248_s9 + $0x40] sm:$0xff]  ;;  %v324_v14 = vld [vmem:[%s1248_s9 + $0x48] sm:$0xff]  ;;  %p1377_p1 = scmp.ne.s32.totalorder %s1361_s18, 0  ;;  %s964_s30 = smov [#allocation10]  }
  0x81   : > { %646 = vmatpush3.bf16.msra.mxu0 %v643_v3  ;;  %v655_v12 = vpack.c.bf16 %v322_v11, %v321_v10  ;;  %v659_v15 = vpack.c.bf16 %v324_v14, %v323_v13  ;;  %v325_v16 = vld [vmem:[%s1248_s9 + $0x50] sm:$0xff]  ;;  %v326_v17 = vld [vmem:[%s1248_s9 + $0x58] sm:$0xff]  ;;  %v327_v19 = vld [vmem:[%s1248_s9 + $0x60] sm:$0xff]  ;;  %s849_s1 = sshll.u32 %s964_s30, 4  ;;  %s850_s1 = int_to_ptr.vmem [resolvable:$false] %s849_s1 }
  0x82   : > { %648 = vmatprep.subr.bf16.mxu0 %v647_v5  ;;  %v663_v18 = vpack.c.bf16 %v326_v17, %v325_v16  ;;  %v328_v20 = vld [vmem:[%s1248_s9 + $0x68] sm:$0xff]  ;;  %v329_v22 = vld [vmem:[%s1248_s9 + $0x70] sm:$0xff]  ;;  %v330_v23 = vld [vmem:[%s1248_s9 + $0x78] sm:$0xff]  ;;  %s851_s24 = scalar_lea.vmem %s850_s1, 512  ;;  %p852_p13 = scmp.lt.s32.totalorder %s1279_s20, %s850_s1 }
  0x83   : > { %v667_v21 = vpack.c.bf16 %v328_v20, %v327_v19  ;;  %v671_v24 = vpack.c.bf16 %v330_v23, %v329_v22  ;;  %v312_v25 = vld [vmem:[%s1241_s23 + $0x8] sm:$0xff]  ;;  %p293_p7 = scmp.lt.s32.totalorder %s292_s15, 3  ;;  %s845_s23 = scalar_lea.vmem %s1279_s20, 256 }
  0x84   : > { %p846_p10 = scmp.ne.s32.totalorder %s1279_s20, %s845_s23  ;;  %p853_p5 = scmp.lt.s32.totalorder %s851_s24, %s845_s23 }
  0x85   : > { %650 = vmatpush3.bf16.msra.mxu0 %v647_v5  ;;  %s1394_s15 = smov (!%p293_p7, %s292_s15), 3 }
  0x86   : > { %652 = vmatprep.subr.bf16.mxu0 %v651_v8  ;;  %s298_s11 = scalar_lea.vmem %s1344_s3, %s1394_s15  ;;  %p847_p4 = pnand %p846_p10, %p1377_p1 }
  0x87   : > { %v581_v26 = vld [vmem:[%s298_s11] ss:$0 sm:$0xff]  ;;  %p854_p8 = por %p853_p5, %p852_p13 }
  0x88   : > { %p848_p9 = pneg %p847_p4 }
  0x89   : > { %654 = vmatpush3.bf16.msra.mxu0 %v651_v8 }
  0x8a   : > { %656 = vmatprep.subr.bf16.mxu0 %v655_v12  ;;  %p855_p12 = pnand %p854_p8, %p848_p9 }
  0x8d   : > { %658 = vmatpush3.bf16.msra.mxu0 %v655_v12 }
  0x8e   : > { %660 = vmatprep.subr.bf16.mxu0 %v659_v15 }
  0x91   : > { %662 = vmatpush3.bf16.msra.mxu0 %v659_v15 }
  0x92   : > { %664 = vmatprep.subr.bf16.mxu0 %v663_v18 }
  0x95   : > { %666 = vmatpush3.bf16.msra.mxu0 %v663_v18 }
  0x96   : > { %668 = vmatprep.subr.bf16.mxu0 %v667_v21 }
  0x99   : > { %670 = vmatpush3.bf16.msra.mxu0 %v667_v21 }
  0x9a   : > { %672 = vmatprep.subr.bf16.mxu0 %v671_v24 }
  0x9d   : > { %674 = vmatpush3.bf16.msra.mxu0 %v671_v24 }
  0xa0   : > { %641 = vmatmul.mubr.f32.vlgmr.msra.gmra.mrb[0].mxu0 %v312_v25 }
 0x173   : > { %v642_v27 = vpop.f32.mrb[0].mxu0 }
 0x174   : > { %v423_v28 = vadd.f32 %v642_v27, %v581_v26  ;;  %v397_v29 = vpop.f32.mrb[1].mxu0 }
 0x175   : > { %v422_v30 = vadd.f32 %v581_v26, %v397_v29 }
 0x176   : > { %425 = vst [vmem:[%s288_s12 + $0x8] sm:$0xff] %v423_v28 }
 0x177   : > { %424 = vst [vmem:[%s288_s12] sm:$0xff] %v422_v30 }
 0x178   : > { %858 = shalt.err (!%p855_p12)
}
 0x179   : > { %s859_s10 = scalar_lea.hbm %s1284_s25, 256  ;;  %s863_s7 = scalar_lea.hbm %s1345_s4, 1024 }
 0x17a   : > { %p860_p3 = scmp.ne.s32.totalorder %s1284_s25, %s859_s10  ;;  %p864_p2 = scmp.lt.u32.totalorder %s1284_s25, %s1345_s4 }
 0x17b   : > { %p865_p0 = scmp.lt.u32.totalorder %s863_s7, %s859_s10  ;;  %p867_p10 = scmp.lt.u32.totalorder %s859_s10, %s1284_s25 }
 0x17c   : > { %p861_p6 = pnand %p860_p3, %p1377_p1 }
 0x17d   : > { %p866_p7 = por %p865_p0, %p864_p2 }
 0x17e   : > { %p862_p11 = pneg %p861_p6 }
 0x17f   : > { %p868_p4 = por %p867_p10, %p866_p7 }
 0x181   : > { %p869_p9 = pnand %p868_p4, %p862_p11 }
 0x183   : > { %872 = shalt.err (!%p869_p9)
}
 0x184   : > { %s965_s12 = smov 128   ;;  %s966_s21 = smov 8  }
 0x185   : > { %681 = dma.vmem_to_hbm [thread:$0]  (%p1377_p1), %s1279_s20, 256, %s1284_s25, %s427_s22, %s965_s12, %s965_s12, %s966_s21  }
 0x186 PF: > { %p697_p13 = scmp.ge.s32.totalorder %s957_s6, 2  ;;  %s456_s5 = sand.u32 1, %s937_s28  }
 0x187   : > { %p1378_p5 = scmp.ne.s32.totalorder %s1362_s19, 0  ;;  %s457_s8 = scalar_lea.sflag [#allocation7], %s456_s5 }
 0x189   : > { %p693_p8 = pnand %p697_p13, %p1378_p5 }
 0x18b   : > { %920 = dma.done.wait (!%p693_p8), %s457_s8, 256  }
 0x18c   : > { %922 = vsyncadd (!%p693_p8), %s457_s8, 4294967040  ;;  %s27_s6 = sadd.s32 1, %s957_s6   ;;  %s1379_s30 = sld [smem:[#allocation17_spill]] }
 0x18d   : > { %p24_p12 = scmp.ge.s32.totalorder %s27_s6, 6   ;;  %s1380_s5 = sld [smem:[#allocation18_spill]] }
 0x18e   : > { %s1381_s25 = smov %s929_s26  ;;  %s1382_s26 = smov %s933_s27 }
 0x18f   : > { %s1383_s27 = smov %s1173_s13  ;;  %s1384_s28 = smov %s941_s29 }
 0x190   : > { %s1385_s29 = smov %s945_s0  ;;  %s1386_s0 = smov %s1091_s17 }
 0x191   :  { %26 = sbr.rel (!%p24_p12) target bundleno = 22 (0x16), region = 102 }
 0x198   :  { %462 = vsyncpa [#allocation6], 1 }
 0x199   :  { %464 = vsyncpa [#allocation6 + $0x1], 1 }
 0x19a   :  { %465 = vsyncpa [#allocation9], 1 }
 0x19b   :  { %467 = vsyncpa [#allocation9 + $0x1], 1 }
 0x19c   :  { %468 = vsyncpa [#allocation7], 1 }
 0x19d   :  { %470 = vsyncpa [#allocation7 + $0x1], 1 }

</bundles_post_ra>
